<compile_context>
chip_gen: v7x
topology: tpu7x:2x2x1
jax: 0.10.0
libtpu: 0.0.40
codegen_flags: <defaults>
</compile_context>

<pallas_src>
import math
from functools import partial

import jax
import jax.numpy as jnp
from jax import lax
from jax.experimental import pallas as pl
from jax.experimental.pallas import tpu as pltpu


def conv_mean_pool_kernel(p_ref, w_ref, b_ref, o_ref):
    """p_ref: (1, KC, M)   im2col patches of one batch element (compute dtype)
       w_ref: (Cout, KC)   fused conv+mean-pool weight      (compute dtype)
       b_ref: (Cout, 1)    conv bias (f32)
       o_ref: (1, Cout, M) pooled output tile (M = H2*W2 in the lane dim)
    """
    acc = jnp.dot(w_ref[...], p_ref[0],
                  preferred_element_type=jnp.float32)      # (Cout, M), f32 accumulate
    o_ref[0] = (acc + b_ref[...]).astype(o_ref.dtype)


@partial(jax.jit, static_argnames=("compute_dtype",))
def conv_mean_pool(x_nchw, weight_oikk, bias_o, *, compute_dtype=jnp.bfloat16):
    """Forward pass of ConvMeanPool. x_nchw: (N, Cin, H, W) -> (N, Cout, H//2, W//2)."""
    N, Cin, H, W = x_nchw.shape
    Cout, Cin_w, K, K2 = weight_oikk.shape
    assert Cin_w == Cin and K == K2
    assert K % 2 == 1, "'same' padding formula assumes odd filter size"
    assert H % 2 == 0 and W % 2 == 0, "AvgPool2d(2) assumes even spatial dims"
    pad = (K - 1) // 2
    H2, W2 = H // 2, W // 2
    Kp = K + 1                    # fused (conv + 2x2 mean-pool) kernel extent
    M = H2 * W2                   # pooled output pixels per batch element
    KC = Kp * Kp * Cin            # im2col contraction depth

    # ---- weight prep: fold the 2x2 mean pool into the conv --------------------
    # pooled[y2, x2, o] = sum_{u,v,i} x_pad[2*y2+u, 2*x2+v, i] * w_fused[u, v, i, o] + b[o]
    w_kkio = jnp.transpose(weight_oikk, (2, 3, 1, 0)).astype(jnp.float32)  # (K,K,Cin,Cout)
    w_fused = jnp.zeros((Kp, Kp, Cin, Cout), jnp.float32)
    for dy in (0, 1):
        for dx in (0, 1):
            w_fused = w_fused.at[dy:dy + K, dx:dx + K].add(w_kkio)
    w_fused = 0.25 * w_fused
    # Transposed to (Cout, KC) so the kernel's matmul directly produces the
    # lane-dense (Cout, M) output tile (no in-kernel transpose / relayout).
    w_t = w_fused.reshape(KC, Cout).T.astype(compute_dtype)                # (Cout, KC)
    b_col = bias_o.reshape(Cout, 1).astype(jnp.float32)                    # (Cout, 1)

    # ---- input prep: zero pad + im2col of the stride-2 (Kp x Kp) windows ------
    x_nhwc = jnp.transpose(x_nchw, (0, 2, 3, 1))
    x_pad = jnp.pad(x_nhwc, ((0, 0), (pad, pad), (pad, pad), (0, 0)))
    cols = []
    for u in range(Kp):
        for v in range(Kp):
            cols.append(x_pad[:, u:u + H:2, v:v + W:2, :])   # (N, H2, W2, Cin)
    patches = jnp.concatenate(cols, axis=-1)                 # (N, H2, W2, KC)
    # (N, KC, M): contraction on sublanes, output pixels on lanes (dense DMA,
    # no 30x Cin-in-lane padding waste).
    patches = patches.reshape(N, M, KC).transpose(0, 2, 1).astype(compute_dtype)

    out = pl.pallas_call(
        conv_mean_pool_kernel,
        out_shape=jax.ShapeDtypeStruct((N, Cout, M), x_nchw.dtype),
        grid_spec=pltpu.PrefetchScalarGridSpec(
            num_scalar_prefetch=0,
            grid=(N,),
            in_specs=[
                pl.BlockSpec((1, KC, M), lambda n: (n, 0, 0)),
                pl.BlockSpec((Cout, KC), lambda n: (0, 0)),
                pl.BlockSpec((Cout, 1), lambda n: (0, 0)),
            ],
            out_specs=pl.BlockSpec((1, Cout, M), lambda n: (n, 0, 0)),
        ),
        compiler_params=pltpu.CompilerParams(
            dimension_semantics=("parallel",)),
    )(patches, w_t, b_col)

    # (N, Cout, H2*W2) -> NCHW with a pure (free) reshape, no transpose.
    return out.reshape(N, Cout, H2, W2)


def reference(x_nchw, weight_oikk, bias_o):
    """Pure-JAX reference: Conv2d(same, stride 1) + AvgPool2d(2)."""
    K = weight_oikk.shape[-1]
    pad = (K - 1) // 2
    y = lax.conv_general_dilated(
        x_nchw, weight_oikk, window_strides=(1, 1),
        padding=((pad, pad), (pad, pad)),
        dimension_numbers=("NCHW", "OIHW", "NCHW"))
    y = y + bias_o[None, :, None, None]
    N, C, H, W = y.shape
    y = y.reshape(N, C, H // 2, 2, W // 2, 2).mean(axis=(3, 5))
    return y


if __name__ == "__main__":
    # Module config: ConvMeanPool(name, in_ch=4, out_ch=8, filter_size=3)
    N, Cin, Cout, H, W, K = 2, 4, 8, 16, 16, 3

    key = jax.random.PRNGKey(0)
    kx, kw, kb = jax.random.split(key, 3)

    x = jax.random.normal(kx, (N, Cin, H, W), jnp.float32)

    # Deterministic parameter init mirroring the module (kaiming_uniform_ weight,
    # default uniform bias init).
    fan_in = Cin * K * K
    w_bound = math.sqrt(6.0 / fan_in)
    weight = jax.random.uniform(kw, (Cout, Cin, K, K), jnp.float32,
                                minval=-w_bound, maxval=w_bound)
    b_bound = 1.0 / math.sqrt(fan_in)
    bias = jax.random.uniform(kb, (Cout,), jnp.float32,
                              minval=-b_bound, maxval=b_bound)

    ref = reference(x, weight, bias)

    # f32-operand path: tight check that the fused-pool / im2col algorithm is exact.
    out_f32 = jax.block_until_ready(
        conv_mean_pool(x, weight, bias, compute_dtype=jnp.float32))
    assert out_f32.shape == (N, Cout, H // 2, W // 2), out_f32.shape
    assert jnp.allclose(out_f32, ref, rtol=1e-4, atol=1e-4), "f32 mismatch vs reference"

    # Default bf16-operand path (MXU-native on v6e/v7x, f32 accumulate); tolerance
    # sized for bf16 operand rounding at contraction depth KC=64.
    out = jax.block_until_ready(conv_mean_pool(x, weight, bias))
    assert out.shape == (N, Cout, H // 2, W // 2), out.shape
    assert jnp.allclose(out, ref, rtol=3e-2, atol=3e-2), "bf16 mismatch vs reference"

    print("KERNEL_OK")
</pallas_src>

<mosaic_0001>
module attributes {stable_mosaic.version = 11 : i64} {
  func.func @conv_mean_pool_kernel(%arg0: i32, %arg1: memref<1x64x64xf32, #tpu.memory_space<vmem>>, %arg2: memref<8x64xf32, #tpu.memory_space<vmem>>, %arg3: memref<8x1xf32, #tpu.memory_space<vmem>>, %arg4: memref<1x8x64xf32, #tpu.memory_space<vmem>>) attributes {dimension_semantics = [#tpu.dimension_semantics<parallel>], iteration_bounds = array<i64: 2>, scalar_prefetch = 0 : i64, scratch_operands = 0 : i64, tpu.core_type = #tpu.core_type<tc>, window_params = [{transform_indices = @transform_0, window_bounds = array<i64: 1, 64, 64>}, {pipeline_mode = #tpu.pipeline_mode<synchronous>, transform_indices = @transform_1, window_bounds = array<i64: 8, 64>}, {pipeline_mode = #tpu.pipeline_mode<synchronous>, transform_indices = @transform_2, window_bounds = array<i64: 8, 1>}, {transform_indices = @transform_3, window_bounds = array<i64: 1, 8, 64>}]} {
    %c0 = arith.constant 0 : index
    %c0_0 = arith.constant 0 : index
    %0 = vector.load %arg2[%c0, %c0_0] : memref<8x64xf32, #tpu.memory_space<vmem>>, vector<8x64xf32>
    %c0_1 = arith.constant 0 : index
    %c0_2 = arith.constant 0 : index
    %c0_3 = arith.constant 0 : index
    %1 = vector.load %arg1[%c0_1, %c0_2, %c0_3] : memref<1x64x64xf32, #tpu.memory_space<vmem>>, vector<1x64x64xf32>
    %2 = vector.shape_cast %1 : vector<1x64x64xf32> to vector<64x64xf32>
    %cst = arith.constant dense<0.000000e+00> : vector<8x64xf32>
    %3 = tpu.matmul %0, %2, %cst {dimension_numbers = #tpu.dot_dimension_numbers<[1], [0], [0], [1], [0, 0, 1, 1], [], []>} : vector<8x64xf32>, vector<64x64xf32>, vector<8x64xf32> -> vector<8x64xf32>
    %c0_4 = arith.constant 0 : index
    %c0_5 = arith.constant 0 : index
    %4 = vector.load %arg3[%c0_4, %c0_5] : memref<8x1xf32, #tpu.memory_space<vmem>>, vector<8x1xf32>
    %5 = vector.broadcast %4 : vector<8x1xf32> to vector<8x64xf32>
    %6 = arith.addf %3, %5 : vector<8x64xf32>
    %c0_6 = arith.constant 0 : index
    %c0_7 = arith.constant 0 : index
    %c0_8 = arith.constant 0 : index
    %7 = vector.load %arg4[%c0_6, %c0_7, %c0_8] : memref<1x8x64xf32, #tpu.memory_space<vmem>>, vector<1x8x64xf32>
    %8 = vector.shape_cast %7 : vector<1x8x64xf32> to vector<8x64xf32>
    %9 = vector.shape_cast %6 : vector<8x64xf32> to vector<1x8x64xf32>
    tpu.vector_store %arg4[%c0_6, %c0_7, %c0_8], %9 {strides = array<i32>} : memref<1x8x64xf32, #tpu.memory_space<vmem>>, vector<1x8x64xf32>,
    return
  }
  func.func @transform_0(%arg0: i32) -> (i32, i32, i32) {
    %c0_i32 = arith.constant 0 : i32
    %c0_i32_0 = arith.constant 0 : i32
    %c0_i32_1 = arith.constant 0 : i32
    return %arg0, %c0_i32, %c0_i32_0 : i32, i32, i32
  }
  func.func @transform_1(%arg0: i32) -> (i32, i32) {
    %c0_i32 = arith.constant 0 : i32
    %c0_i32_0 = arith.constant 0 : i32
    %c0_i32_1 = arith.constant 0 : i32
    return %c0_i32, %c0_i32_0 : i32, i32
  }
  func.func @transform_2(%arg0: i32) -> (i32, i32) {
    %c0_i32 = arith.constant 0 : i32
    %c0_i32_0 = arith.constant 0 : i32
    %c0_i32_1 = arith.constant 0 : i32
    return %c0_i32, %c0_i32_0 : i32, i32
  }
  func.func @transform_3(%arg0: i32) -> (i32, i32, i32) {
    %c0_i32 = arith.constant 0 : i32
    %c0_i32_0 = arith.constant 0 : i32
    %c0_i32_1 = arith.constant 0 : i32
    return %arg0, %c0_i32, %c0_i32_0 : i32, i32, i32
  }
}

</mosaic_0001>

<bundles_post_ra>
// kernel: conv_mean_pool.1
= control target key start
LH: loop header
LB: loop body
LE: loop exit
PB: predicated region body
PF: predicated region fallthrough
CT: control target
= control target key end

     0   :  { %s409_s12 = smov 0   ;;  %s436_s0 = inlined_call_operand.vmem [shape: f32[2,64,64], index: 0, kind: input, shape index: {}]   ;;  %s437_s1 = inlined_call_operand.vmem [shape: f32[8,64], index: 1, kind: input, shape index: {}]   ;;  %s438_s2 = inlined_call_operand.vmem [shape: f32[8,1], index: 2, kind: input, shape index: {}]   ;;  %s439_s3 = inlined_call_operand.vmem [shape: f32[2,8,64], index: 3, kind: output, shape index: {}]  }
   0x1 LB: > { %s312_s13 = sadd.s32 4294967295, %s383_s12   ;;  %p316_p0 = scmp.ge.s32.totalorder %s383_s12, 1  ;;  %s383_s12 = sphi %s409_s12, %s13_s12  }
   0x2   : > { %p137_p1 = scmp.lt.s32.totalorder %s383_s12, 3 }
   0x4   : > { %p138_p2 = pnand %p316_p0, %p137_p1 }
   0x5   : > { %p160_p3 = scmp.lt.s32.totalorder (!%p138_p2), %s312_s13, 1  ;;  %v385_v0 = vmov (!%p138_p2), 0.0|0.0   ;;  %vm386_vm0 = vmmov (!%p138_p2), 0   ;;  %v387_v1 = vmov (!%p138_p2), 0.0   ;;  %v178_v2 = vld [vmem:[%s438_s2] sm:$0xff] (!%p138_p2)  ;;  %v388_v3 = vmov (!%p138_p2), 0  }
   0x6   : > { %141 = sbr.rel (%p138_p2) target bundleno = 249 (0xf9), region = 32  ;;  %352 = vmatprep.subr.bf16.mxu0 (!%p138_p2), %v385_v0  ;;  %349 = vmatprep.mubr.msk.f32.mxu0 (!%p138_p2), %vm386_vm0, %v387_v1  ;;  %v169_v16 = vld [vmem:[%s437_s1] sm:$0xff] (!%p138_p2)  ;;  %vm184_vm1 = vcmask (!%p138_p2), 523264  }
   0x7   : > { %376 = vset.pattern.permute.xlu0 (!%p138_p2), %v388_v3 }
   0x8   : > { %181 = vperm.xlu0 (!%p138_p2), %376, %v178_v2  }
   0xd   : > { %s441_s13 = smov (!%p160_p3, %s312_s13), 1 }
   0xe   : > { %s323_s16 = sshll.u32 %s441_s13, 6  ;;  %s319_s22 = sshll.u32 %s441_s13, 3 }
   0xf   : > { %s164_s19 = scalar_lea.vmem %s436_s0, %s323_s16  ;;  %s168_s25 = scalar_lea.vmem %s439_s3, %s319_s22 }
  0x10   : > { %v170_v4 = vld [vmem:[%s164_s19] sm:$0xff]  ;;  %v171_v5 = vld [vmem:[%s164_s19 + $0x8] sm:$0xff]  ;;  %v172_v6 = vld [vmem:[%s164_s19 + $0x10] sm:$0xff] }
  0x11   : > { %v353_v7 = vpack.c.bf16 %v171_v5, %v170_v4  ;;  %v173_v8 = vld [vmem:[%s164_s19 + $0x18] sm:$0xff]  ;;  %v174_v10 = vld [vmem:[%s164_s19 + $0x20] sm:$0xff]  ;;  %v175_v11 = vld [vmem:[%s164_s19 + $0x28] sm:$0xff] }
  0x12   : > { %v356_v9 = vpack.c.bf16 %v173_v8, %v172_v6  ;;  %v359_v12 = vpack.c.bf16 %v175_v11, %v174_v10  ;;  %v176_v13 = vld [vmem:[%s164_s19 + $0x30] sm:$0xff]  ;;  %v177_v14 = vld [vmem:[%s164_s19 + $0x38] sm:$0xff] }
  0x13   : > { %354 = vmatpush3.bf16.msra.mxu0 %v353_v7  ;;  %v362_v15 = vpack.c.bf16 %v177_v14, %v176_v13 }
  0x14   : > { %355 = vmatprep.subr.bf16.mxu0 %v385_v0 }
  0x17   : > { %357 = vmatpush3.bf16.msra.mxu0 %v356_v9 }
  0x18   : > { %358 = vmatprep.subr.bf16.mxu0 %v385_v0 }
  0x1b   : > { %360 = vmatpush3.bf16.msra.mxu0 %v359_v12 }
  0x1c   : > { %361 = vmatprep.subr.bf16.mxu0 %v385_v0 }
  0x1f   : > { %363 = vmatpush3.bf16.msra.mxu0 %v362_v15 }
  0x22   : > { %350 = vmatmul.mubr.msk.f32.vlgmr.msra.gmra.mrb[0].mxu0 %vm184_vm1, %v169_v16 }
  0x87   : > { %v182_v17 = vpop.permute.xlu0 %181 }
  0xf5   : > { %v254_v18 = vpop.f32.mrb[0].mxu0 }
  0xf6   : > { %v255_v19 = vadd.f32 %v254_v18, %v182_v17  ;;  %v351_v20 = vpop.f32.mrb[1].mxu0 }
  0xf8   : > { %258 = vst.msk [vmem:[%s168_s25] sm:$0xff] %vm184_vm1, %v255_v19 }
  0xf9 PF: > { %s13_s12 = sadd.s32 1, %s383_s12  }
  0xfa   : > { %p10_p4 = scmp.ge.s32.totalorder %s13_s12, 4  }
  0xfc   :  { %12 = sbr.rel (!%p10_p4) target bundleno = 1 (0x1), region = 62 }

</bundles_post_ra>
